<compile_context>
chip_gen: v7x
topology: tpu7x:2x2x1
jax: 0.10.0
libtpu: 0.0.40
codegen_flags: <defaults>
</compile_context>

<pallas_src>
import jax
import jax.numpy as jnp
from jax.experimental import pallas as pl
from jax.experimental.pallas import tpu as pltpu


def _leaky_relu(z, slope=0.2):
    # slope < 1  =>  max(z, slope*z) == LeakyReLU(z); single VPU vmax.
    return jnp.maximum(z, slope * z)


def encoder_id_kernel(
    x_ref,
    w1_ref, b1_ref,
    w2_ref, b2_ref,
    w3_ref, b3_ref,
    w4_ref, b4_ref,
    wm_ref, bm_ref,
    wl_ref, bl_ref,
    mean_ref, logvar_ref,
):
    x = x_ref[...]

    # fc1 + LeakyReLU
    h = _leaky_relu(
        jnp.dot(x, w1_ref[...], preferred_element_type=jnp.float32) + b1_ref[...]
    )
    # fc2..fc4: LeakyReLU(fc_k(h)) + h  (residual)
    h = _leaky_relu(
        jnp.dot(h, w2_ref[...], preferred_element_type=jnp.float32) + b2_ref[...]
    ) + h
    h = _leaky_relu(
        jnp.dot(h, w3_ref[...], preferred_element_type=jnp.float32) + b3_ref[...]
    ) + h
    h = _leaky_relu(
        jnp.dot(h, w4_ref[...], preferred_element_type=jnp.float32) + b4_ref[...]
    ) + h

    # mean / logvar heads written directly (no lane padding, no wrapper slices)
    mean_ref[...] = (
        jnp.dot(h, wm_ref[...], preferred_element_type=jnp.float32) + bm_ref[...]
    ).astype(mean_ref.dtype)
    logvar_ref[...] = (
        jnp.dot(h, wl_ref[...], preferred_element_type=jnp.float32) + bl_ref[...]
    ).astype(logvar_ref.dtype)


def encoder_id_forward(x, params, *, tile_b=4096):
    """x: [B, input_dim] float32. params: dict name -> (w [in,out], b [out])."""
    B, input_dim = x.shape
    hidden_dim = params["fc1"][0].shape[1]
    latent_dim = params["fc_mean"][0].shape[1]

    # ---- row tile: multiple of 8, large enough to amortize per-step overhead,
    # capped so double-buffered x + mean + logvar tiles fit scoped VMEM on all
    # generations (v5e 16 MiB default scoped, v7x 64 MiB physical).
    row_io_bytes = (input_dim + 2 * latent_dim) * 4
    vmem_budget = 24 * 1024 * 1024
    tb = min(int(tile_b), ((B + 7) // 8) * 8)
    tb = min(tb, vmem_budget // (2 * row_io_bytes))
    tb = max(8, (tb // 8) * 8)

    # No jnp.pad of rows: Pallas clips the trailing partial block.
    grid = (pl.cdiv(B, tb),)

    flat_args = [x]
    for name in ("fc1", "fc2", "fc3", "fc4", "fc_mean", "fc_logvar"):
        w, b = params[name]
        flat_args.append(w)
        flat_args.append(b.reshape(1, -1))

    in_specs = [pl.BlockSpec((tb, input_dim), lambda i: (i, 0))]
    for a in flat_args[1:]:
        # weights / biases: constant block index -> fetched once, VMEM-resident
        in_specs.append(pl.BlockSpec(a.shape, lambda i: (0, 0)))

    out_specs = [
        pl.BlockSpec((tb, latent_dim), lambda i: (i, 0)),
        pl.BlockSpec((tb, latent_dim), lambda i: (i, 0)),
    ]
    out_shape = (
        jax.ShapeDtypeStruct((B, latent_dim), jnp.float32),
        jax.ShapeDtypeStruct((B, latent_dim), jnp.float32),
    )

    weight_bytes = sum(int(a.size) * a.dtype.itemsize for a in flat_args[1:])
    flops = 2 * B * (
        input_dim * hidden_dim
        + 3 * hidden_dim * hidden_dim
        + 2 * hidden_dim * latent_dim
    )
    bytes_accessed = (
        int(x.size) * x.dtype.itemsize + weight_bytes + 2 * B * latent_dim * 4
    )
    cost = pl.CostEstimate(
        flops=int(flops), transcendentals=0, bytes_accessed=int(bytes_accessed)
    )

    # Raise the scoped-VMEM limit only if the double-buffered tiles + resident
    # weights approach the smallest default (v5e: 16 MiB).
    vmem_need = 2 * tb * row_io_bytes + 2 * weight_bytes + (1 << 20)
    vmem_limit = (
        int(min(vmem_need * 2, 48 * 1024 * 1024))
        if vmem_need > 12 * 1024 * 1024
        else None
    )

    mean, logvar = pl.pallas_call(
        encoder_id_kernel,
        out_shape=out_shape,
        grid=grid,
        in_specs=in_specs,
        out_specs=out_specs,
        compiler_params=pltpu.CompilerParams(
            dimension_semantics=("parallel",),
            vmem_limit_bytes=vmem_limit,
        ),
        cost_estimate=cost,
    )(*flat_args)
    return mean, logvar


def init_encoder_id_params(key, input_dim, hidden_dim, latent_dim):
    """Deterministic init mirroring the PyTorch module:
    xavier_normal_ (leaky_relu gain for fc1..fc4) for weights,
    PyTorch-default uniform(+-1/sqrt(fan_in)) for biases."""
    leaky_gain = (2.0 / (1.0 + 0.01 ** 2)) ** 0.5  # calculate_gain('leaky_relu')

    dims = {
        "fc1": (input_dim, hidden_dim, leaky_gain),
        "fc2": (hidden_dim, hidden_dim, leaky_gain),
        "fc3": (hidden_dim, hidden_dim, leaky_gain),
        "fc4": (hidden_dim, hidden_dim, leaky_gain),
        "fc_mean": (hidden_dim, latent_dim, 1.0),
        "fc_logvar": (hidden_dim, latent_dim, 1.0),
    }

    params = {}
    for name, (fan_in, fan_out, gain) in dims.items():
        key, kw, kb = jax.random.split(key, 3)
        std = gain * (2.0 / (fan_in + fan_out)) ** 0.5
        # weight stored as [in, out] (transposed vs PyTorch [out, in])
        w = std * jax.random.normal(kw, (fan_in, fan_out), dtype=jnp.float32)
        bound = 1.0 / (fan_in ** 0.5)
        b = jax.random.uniform(
            kb, (fan_out,), minval=-bound, maxval=bound, dtype=jnp.float32
        )
        params[name] = (w, b)
    return params


def reference_forward(x, params):
    """Pure-JAX reference of the PyTorch forward, for a correctness check."""
    def lin(h, name):
        w, b = params[name]
        return h @ w + b

    h = _leaky_relu(lin(x, "fc1"))
    h = _leaky_relu(lin(h, "fc2")) + h
    h = _leaky_relu(lin(h, "fc3")) + h
    h = _leaky_relu(lin(h, "fc4")) + h
    return lin(h, "fc_mean"), lin(h, "fc_logvar")


if __name__ == "__main__":
    input_dim, hidden_dim, latent_dim = 32, 32, 16
    batch = 50  # not a tile multiple: exercises the clipped trailing block

    key = jax.random.PRNGKey(0)
    key, kx = jax.random.split(key)
    x = jax.random.normal(kx, (batch, input_dim), dtype=jnp.float32)

    params = init_encoder_id_params(key, input_dim, hidden_dim, latent_dim)

    # small tile so the batch grid actually has multiple steps at this toy size
    mean, logvar = encoder_id_forward(x, params, tile_b=16)
    mean = jax.block_until_ready(mean)
    logvar = jax.block_until_ready(logvar)

    ref_mean, ref_logvar = reference_forward(x, params)
    assert mean.shape == (batch, latent_dim)
    assert logvar.shape == (batch, latent_dim)
    assert jnp.allclose(mean, ref_mean, atol=1e-5, rtol=1e-5)
    assert jnp.allclose(logvar, ref_logvar, atol=1e-5, rtol=1e-5)

    print("KERNEL_OK")
</pallas_src>

<mosaic_0001>
module attributes {stable_mosaic.version = 11 : i64} {
  func.func @encoder_id_kernel(%arg0: i32, %arg1: memref<16x32xf32, #tpu.memory_space<vmem>>, %arg2: memref<32x32xf32, #tpu.memory_space<vmem>>, %arg3: memref<1x32xf32, #tpu.memory_space<vmem>>, %arg4: memref<32x32xf32, #tpu.memory_space<vmem>>, %arg5: memref<1x32xf32, #tpu.memory_space<vmem>>, %arg6: memref<32x32xf32, #tpu.memory_space<vmem>>, %arg7: memref<1x32xf32, #tpu.memory_space<vmem>>, %arg8: memref<32x32xf32, #tpu.memory_space<vmem>>, %arg9: memref<1x32xf32, #tpu.memory_space<vmem>>, %arg10: memref<32x16xf32, #tpu.memory_space<vmem>>, %arg11: memref<1x16xf32, #tpu.memory_space<vmem>>, %arg12: memref<32x16xf32, #tpu.memory_space<vmem>>, %arg13: memref<1x16xf32, #tpu.memory_space<vmem>>, %arg14: memref<16x16xf32, #tpu.memory_space<vmem>>, %arg15: memref<16x16xf32, #tpu.memory_space<vmem>>) attributes {dimension_semantics = [#tpu.dimension_semantics<parallel>], iteration_bounds = array<i64: 4>, scalar_prefetch = 0 : i64, scratch_operands = 0 : i64, tpu.core_type = #tpu.core_type<tc>, window_params = [{transform_indices = @transform_0, window_bounds = array<i64: 16, 32>}, {pipeline_mode = #tpu.pipeline_mode<synchronous>, transform_indices = @transform_1, window_bounds = array<i64: 32, 32>}, {pipeline_mode = #tpu.pipeline_mode<synchronous>, transform_indices = @transform_2, window_bounds = array<i64: 1, 32>}, {pipeline_mode = #tpu.pipeline_mode<synchronous>, transform_indices = @transform_3, window_bounds = array<i64: 32, 32>}, {pipeline_mode = #tpu.pipeline_mode<synchronous>, transform_indices = @transform_4, window_bounds = array<i64: 1, 32>}, {pipeline_mode = #tpu.pipeline_mode<synchronous>, transform_indices = @transform_5, window_bounds = array<i64: 32, 32>}, {pipeline_mode = #tpu.pipeline_mode<synchronous>, transform_indices = @transform_6, window_bounds = array<i64: 1, 32>}, {pipeline_mode = #tpu.pipeline_mode<synchronous>, transform_indices = @transform_7, window_bounds = array<i64: 32, 32>}, {pipeline_mode = #tpu.pipeline_mode<synchronous>, transform_indices = @transform_8, window_bounds = array<i64: 1, 32>}, {pipeline_mode = #tpu.pipeline_mode<synchronous>, transform_indices = @transform_9, window_bounds = array<i64: 32, 16>}, {pipeline_mode = #tpu.pipeline_mode<synchronous>, transform_indices = @transform_10, window_bounds = array<i64: 1, 16>}, {pipeline_mode = #tpu.pipeline_mode<synchronous>, transform_indices = @transform_11, window_bounds = array<i64: 32, 16>}, {pipeline_mode = #tpu.pipeline_mode<synchronous>, transform_indices = @transform_12, window_bounds = array<i64: 1, 16>}, {transform_indices = @transform_13, window_bounds = array<i64: 16, 16>}, {transform_indices = @transform_14, window_bounds = array<i64: 16, 16>}]} {
    %c0 = arith.constant 0 : index
    %c0_0 = arith.constant 0 : index
    %0 = vector.load %arg1[%c0, %c0_0] : memref<16x32xf32, #tpu.memory_space<vmem>>, vector<16x32xf32>
    %c0_1 = arith.constant 0 : index
    %c0_2 = arith.constant 0 : index
    %1 = vector.load %arg2[%c0_1, %c0_2] : memref<32x32xf32, #tpu.memory_space<vmem>>, vector<32x32xf32>
    %cst = arith.constant dense<0.000000e+00> : vector<16x32xf32>
    %2 = tpu.matmul %0, %1, %cst {dimension_numbers = #tpu.dot_dimension_numbers<[1], [0], [0], [1], [0, 0, 1, 1], [], []>} : vector<16x32xf32>, vector<32x32xf32>, vector<16x32xf32> -> vector<16x32xf32>
    %c0_3 = arith.constant 0 : index
    %c0_4 = arith.constant 0 : index
    %3 = vector.load %arg3[%c0_3, %c0_4] : memref<1x32xf32, #tpu.memory_space<vmem>>, vector<1x32xf32>
    %4 = vector.broadcast %3 : vector<1x32xf32> to vector<16x32xf32>
    %5 = arith.addf %2, %4 : vector<16x32xf32>
    %cst_5 = arith.constant 2.000000e-01 : f32
    %6 = vector.broadcast %cst_5 : f32 to vector<16x32xf32>
    %7 = arith.mulf %6, %5 : vector<16x32xf32>
    %8 = arith.maximumf %5, %7 : vector<16x32xf32>
    %c0_6 = arith.constant 0 : index
    %c0_7 = arith.constant 0 : index
    %9 = vector.load %arg4[%c0_6, %c0_7] : memref<32x32xf32, #tpu.memory_space<vmem>>, vector<32x32xf32>
    %cst_8 = arith.constant dense<0.000000e+00> : vector<16x32xf32>
    %10 = tpu.matmul %8, %9, %cst_8 {dimension_numbers = #tpu.dot_dimension_numbers<[1], [0], [0], [1], [0, 0, 1, 1], [], []>} : vector<16x32xf32>, vector<32x32xf32>, vector<16x32xf32> -> vector<16x32xf32>
    %c0_9 = arith.constant 0 : index
    %c0_10 = arith.constant 0 : index
    %11 = vector.load %arg5[%c0_9, %c0_10] : memref<1x32xf32, #tpu.memory_space<vmem>>, vector<1x32xf32>
    %12 = vector.broadcast %11 : vector<1x32xf32> to vector<16x32xf32>
    %13 = arith.addf %10, %12 : vector<16x32xf32>
    %cst_11 = arith.constant 2.000000e-01 : f32
    %14 = vector.broadcast %cst_11 : f32 to vector<16x32xf32>
    %15 = arith.mulf %14, %13 : vector<16x32xf32>
    %16 = arith.maximumf %13, %15 : vector<16x32xf32>
    %17 = arith.addf %16, %8 : vector<16x32xf32>
    %c0_12 = arith.constant 0 : index
    %c0_13 = arith.constant 0 : index
    %18 = vector.load %arg6[%c0_12, %c0_13] : memref<32x32xf32, #tpu.memory_space<vmem>>, vector<32x32xf32>
    %cst_14 = arith.constant dense<0.000000e+00> : vector<16x32xf32>
    %19 = tpu.matmul %17, %18, %cst_14 {dimension_numbers = #tpu.dot_dimension_numbers<[1], [0], [0], [1], [0, 0, 1, 1], [], []>} : vector<16x32xf32>, vector<32x32xf32>, vector<16x32xf32> -> vector<16x32xf32>
    %c0_15 = arith.constant 0 : index
    %c0_16 = arith.constant 0 : index
    %20 = vector.load %arg7[%c0_15, %c0_16] : memref<1x32xf32, #tpu.memory_space<vmem>>, vector<1x32xf32>
    %21 = vector.broadcast %20 : vector<1x32xf32> to vector<16x32xf32>
    %22 = arith.addf %19, %21 : vector<16x32xf32>
    %cst_17 = arith.constant 2.000000e-01 : f32
    %23 = vector.broadcast %cst_17 : f32 to vector<16x32xf32>
    %24 = arith.mulf %23, %22 : vector<16x32xf32>
    %25 = arith.maximumf %22, %24 : vector<16x32xf32>
    %26 = arith.addf %25, %17 : vector<16x32xf32>
    %c0_18 = arith.constant 0 : index
    %c0_19 = arith.constant 0 : index
    %27 = vector.load %arg8[%c0_18, %c0_19] : memref<32x32xf32, #tpu.memory_space<vmem>>, vector<32x32xf32>
    %cst_20 = arith.constant dense<0.000000e+00> : vector<16x32xf32>
    %28 = tpu.matmul %26, %27, %cst_20 {dimension_numbers = #tpu.dot_dimension_numbers<[1], [0], [0], [1], [0, 0, 1, 1], [], []>} : vector<16x32xf32>, vector<32x32xf32>, vector<16x32xf32> -> vector<16x32xf32>
    %c0_21 = arith.constant 0 : index
    %c0_22 = arith.constant 0 : index
    %29 = vector.load %arg9[%c0_21, %c0_22] : memref<1x32xf32, #tpu.memory_space<vmem>>, vector<1x32xf32>
    %30 = vector.broadcast %29 : vector<1x32xf32> to vector<16x32xf32>
    %31 = arith.addf %28, %30 : vector<16x32xf32>
    %cst_23 = arith.constant 2.000000e-01 : f32
    %32 = vector.broadcast %cst_23 : f32 to vector<16x32xf32>
    %33 = arith.mulf %32, %31 : vector<16x32xf32>
    %34 = arith.maximumf %31, %33 : vector<16x32xf32>
    %35 = arith.addf %34, %26 : vector<16x32xf32>
    %c0_24 = arith.constant 0 : index
    %c0_25 = arith.constant 0 : index
    %36 = vector.load %arg10[%c0_24, %c0_25] : memref<32x16xf32, #tpu.memory_space<vmem>>, vector<32x16xf32>
    %cst_26 = arith.constant dense<0.000000e+00> : vector<16x16xf32>
    %37 = tpu.matmul %35, %36, %cst_26 {dimension_numbers = #tpu.dot_dimension_numbers<[1], [0], [0], [1], [0, 0, 1, 1], [], []>} : vector<16x32xf32>, vector<32x16xf32>, vector<16x16xf32> -> vector<16x16xf32>
    %c0_27 = arith.constant 0 : index
    %c0_28 = arith.constant 0 : index
    %38 = vector.load %arg11[%c0_27, %c0_28] : memref<1x16xf32, #tpu.memory_space<vmem>>, vector<1x16xf32>
    %39 = vector.broadcast %38 : vector<1x16xf32> to vector<16x16xf32>
    %40 = arith.addf %37, %39 : vector<16x16xf32>
    %c0_29 = arith.constant 0 : index
    %c0_30 = arith.constant 0 : index
    %41 = vector.load %arg14[%c0_29, %c0_30] : memref<16x16xf32, #tpu.memory_space<vmem>>, vector<16x16xf32>
    tpu.vector_store %arg14[%c0_29, %c0_30], %40 {strides = array<i32>} : memref<16x16xf32, #tpu.memory_space<vmem>>, vector<16x16xf32>,
    %c0_31 = arith.constant 0 : index
    %c0_32 = arith.constant 0 : index
    %42 = vector.load %arg12[%c0_31, %c0_32] : memref<32x16xf32, #tpu.memory_space<vmem>>, vector<32x16xf32>
    %cst_33 = arith.constant dense<0.000000e+00> : vector<16x16xf32>
    %43 = tpu.matmul %35, %42, %cst_33 {dimension_numbers = #tpu.dot_dimension_numbers<[1], [0], [0], [1], [0, 0, 1, 1], [], []>} : vector<16x32xf32>, vector<32x16xf32>, vector<16x16xf32> -> vector<16x16xf32>
    %c0_34 = arith.constant 0 : index
    %c0_35 = arith.constant 0 : index
    %44 = vector.load %arg13[%c0_34, %c0_35] : memref<1x16xf32, #tpu.memory_space<vmem>>, vector<1x16xf32>
    %45 = vector.broadcast %44 : vector<1x16xf32> to vector<16x16xf32>
    %46 = arith.addf %43, %45 : vector<16x16xf32>
    %c0_36 = arith.constant 0 : index
    %c0_37 = arith.constant 0 : index
    %47 = vector.load %arg15[%c0_36, %c0_37] : memref<16x16xf32, #tpu.memory_space<vmem>>, vector<16x16xf32>
    tpu.vector_store %arg15[%c0_36, %c0_37], %46 {strides = array<i32>} : memref<16x16xf32, #tpu.memory_space<vmem>>, vector<16x16xf32>,
    return
  }
  func.func @transform_0(%arg0: i32) -> (i32, i32) {
    %c0_i32 = arith.constant 0 : i32
    %c0_i32_0 = arith.constant 0 : i32
    return %arg0, %c0_i32 : i32, i32
  }
  func.func @transform_1(%arg0: i32) -> (i32, i32) {
    %c0_i32 = arith.constant 0 : i32
    %c0_i32_0 = arith.constant 0 : i32
    %c0_i32_1 = arith.constant 0 : i32
    return %c0_i32, %c0_i32_0 : i32, i32
  }
  func.func @transform_2(%arg0: i32) -> (i32, i32) {
    %c0_i32 = arith.constant 0 : i32
    %c0_i32_0 = arith.constant 0 : i32
    %c0_i32_1 = arith.constant 0 : i32
    return %c0_i32, %c0_i32_0 : i32, i32
  }
  func.func @transform_3(%arg0: i32) -> (i32, i32) {
    %c0_i32 = arith.constant 0 : i32
    %c0_i32_0 = arith.constant 0 : i32
    %c0_i32_1 = arith.constant 0 : i32
    return %c0_i32, %c0_i32_0 : i32, i32
  }
  func.func @transform_4(%arg0: i32) -> (i32, i32) {
    %c0_i32 = arith.constant 0 : i32
    %c0_i32_0 = arith.constant 0 : i32
    %c0_i32_1 = arith.constant 0 : i32
    return %c0_i32, %c0_i32_0 : i32, i32
  }
  func.func @transform_5(%arg0: i32) -> (i32, i32) {
    %c0_i32 = arith.constant 0 : i32
    %c0_i32_0 = arith.constant 0 : i32
    %c0_i32_1 = arith.constant 0 : i32
    return %c0_i32, %c0_i32_0 : i32, i32
  }
  func.func @transform_6(%arg0: i32) -> (i32, i32) {
    %c0_i32 = arith.constant 0 : i32
    %c0_i32_0 = arith.constant 0 : i32
    %c0_i32_1 = arith.constant 0 : i32
    return %c0_i32, %c0_i32_0 : i32, i32
  }
  func.func @transform_7(%arg0: i32) -> (i32, i32) {
    %c0_i32 = arith.constant 0 : i32
    %c0_i32_0 = arith.constant 0 : i32
    %c0_i32_1 = arith.constant 0 : i32
    return %c0_i32, %c0_i32_0 : i32, i32
  }
  func.func @transform_8(%arg0: i32) -> (i32, i32) {
    %c0_i32 = arith.constant 0 : i32
    %c0_i32_0 = arith.constant 0 : i32
    %c0_i32_1 = arith.constant 0 : i32
    return %c0_i32, %c0_i32_0 : i32, i32
  }
  func.func @transform_9(%arg0: i32) -> (i32, i32) {
    %c0_i32 = arith.constant 0 : i32
    %c0_i32_0 = arith.constant 0 : i32
    %c0_i32_1 = arith.constant 0 : i32
    return %c0_i32, %c0_i32_0 : i32, i32
  }
  func.func @transform_10(%arg0: i32) -> (i32, i32) {
    %c0_i32 = arith.constant 0 : i32
    %c0_i32_0 = arith.constant 0 : i32
    %c0_i32_1 = arith.constant 0 : i32
    return %c0_i32, %c0_i32_0 : i32, i32
  }
  func.func @transform_11(%arg0: i32) -> (i32, i32) {
    %c0_i32 = arith.constant 0 : i32
    %c0_i32_0 = arith.constant 0 : i32
    %c0_i32_1 = arith.constant 0 : i32
    return %c0_i32, %c0_i32_0 : i32, i32
  }
  func.func @transform_12(%arg0: i32) -> (i32, i32) {
    %c0_i32 = arith.constant 0 : i32
    %c0_i32_0 = arith.constant 0 : i32
    %c0_i32_1 = arith.constant 0 : i32
    return %c0_i32, %c0_i32_0 : i32, i32
  }
  func.func @transform_13(%arg0: i32) -> (i32, i32) {
    %c0_i32 = arith.constant 0 : i32
    %c0_i32_0 = arith.constant 0 : i32
    return %arg0, %c0_i32 : i32, i32
  }
  func.func @transform_14(%arg0: i32) -> (i32, i32) {
    %c0_i32 = arith.constant 0 : i32
    %c0_i32_0 = arith.constant 0 : i32
    return %arg0, %c0_i32 : i32, i32
  }
}

</mosaic_0001>

<bundles_post_ra>
// kernel: tpu_custom_call.1
= control target key start
LH: loop header
LB: loop body
LE: loop exit
PB: predicated region body
PF: predicated region fallthrough
CT: control target
= control target key end

     0   :  { %s2305_s0 = inlined_call_operand.vmem [shape: f32[50,32], index: 0, kind: input, shape index: {}]   ;;  %s2306_s1 = inlined_call_operand.vmem [shape: f32[32,32], index: 1, kind: input, shape index: {}]   ;;  %s2307_s2 = inlined_call_operand.vmem [shape: f32[1,32], index: 2, kind: input, shape index: {}]   ;;  %s2308_s3 = inlined_call_operand.vmem [shape: f32[32,32], index: 3, kind: input, shape index: {}]   ;;  %s2309_s4 = inlined_call_operand.vmem [shape: f32[1,32], index: 4, kind: input, shape index: {}]   ;;  %s2310_s5 = inlined_call_operand.vmem [shape: f32[32,32], index: 5, kind: input, shape index: {}]   ;;  %s2311_s6 = inlined_call_operand.vmem [shape: f32[1,32], index: 6, kind: input, shape index: {}]   ;;  %s2312_s7 = inlined_call_operand.vmem [shape: f32[32,32], index: 7, kind: input, shape index: {}]   ;;  %s2313_s8 = inlined_call_operand.vmem [shape: f32[1,32], index: 8, kind: input, shape index: {}]   ;;  %s2314_s9 = inlined_call_operand.vmem [shape: f32[32,16], index: 9, kind: input, shape index: {}]   ;;  %s2315_s10 = inlined_call_operand.vmem [shape: f32[1,16], index: 10, kind: input, shape index: {}]   ;;  %s2316_s11 = inlined_call_operand.vmem [shape: f32[32,16], index: 11, kind: input, shape index: {}]   ;;  %s2317_s12 = inlined_call_operand.vmem [shape: f32[1,16], index: 12, kind: input, shape index: {}]   ;;  %s2318_s13 = inlined_call_operand.vmem [shape: f32[50,16], index: 13, kind: output, shape index: {0}]   ;;  %s2319_s14 = inlined_call_operand.vmem [shape: f32[50,16], index: 14, kind: output, shape index: {1}]  }
   0x1   :  { %2320 = sst [smem:[#allocation4_spill]] %s2305_s0 }
   0x2   :  { %2321 = sst [smem:[#allocation5_spill]] %s2306_s1 }
   0x3   :  { %2322 = sst [smem:[#allocation6_spill]] %s2307_s2 }
   0x4   :  { %2323 = sst [smem:[#allocation7_spill]] %s2308_s3 }
   0x5   :  { %2324 = sst [smem:[#allocation8_spill]] %s2309_s4 }
   0x6   :  { %s2085_s29 = smov 0   ;;  %s2087_s30 = smov 0  }
   0x7   :  { %s2089_s15 = smov 0  }
   0x8 LB: > { %s2098_s16 = sadd.s32 4294967295, %s1944_s15   ;;  %s2100_s17 = sadd.s32 1, %s1944_s15   ;;  %s1944_s15 = sphi %s2089_s15, %s2333_s15   ;;  %s1940_s30 = sphi %s2087_s30, %s2332_s30   ;;  %s1936_s29 = sphi %s2085_s29, %s2331_s29  }
   0x9   : > { %s307_s18 = ssub.s32 %s1944_s15, %s2100_s17  ;;  %s310_s19 = sadd.s32 1, %s1940_s30 }
   0xa   : > { %p308_p0 = scmp.eq.s32.totalorder %s307_s18, 0  ;;  %p320_p1 = scmp.ne.s32.totalorder %s1940_s30, %s1936_s29 }
   0xb   : > { %p321_p2 = scmp.eq.s32.totalorder %s2098_s16, 3  ;;  %p1495_p3 = scmp.ge.s32.totalorder %s1944_s15, 1 }
   0xc   : > { %s2108_s20 = scalar_select %p308_p0, %s1940_s30, %s310_s19  }
   0xd   : > { %p2110_p4 = por %p321_p2, %p320_p1  ;;  %p424_p5 = scmp.lt.s32.totalorder %s1944_s15, 5 }
   0xf   : > { %p425_p6 = pnand %p1495_p3, %p424_p5 }
  0x10   : > { %s2326_s1 = sld [smem:[#allocation5_spill]] (!%p425_p6)  ;;  %s2124_s28 = sshll.u32 (!%p425_p6), %s2098_s16, 1  ;;  %vm514_vm0 = vcmask (!%p425_p6), 261120   ;;  %v698_v23 = vld [vmem:[%s2310_s5] sm:$0xff] (!%p425_p6)  ;;  %v699_v24 = vld [vmem:[%s2310_s5 + $0x8] sm:$0xff] (!%p425_p6)  ;;  %v700_v26 = vld [vmem:[%s2310_s5 + $0x10] sm:$0xff] (!%p425_p6) }
  0x11   : > { %428 = sbr.rel (%p425_p6) target bundleno = 1240 (0x4d8), region = 72  ;;  %p482_p7 = scmp.lt.s32.totalorder (!%p425_p6), %s2124_s28, 6  ;;  %v1674_v25 = vpack.c.bf16 (!%p425_p6), %v699_v24, %v698_v23  ;;  %v701_v27 = vld [vmem:[%s2310_s5 + $0x18] sm:$0xff] (!%p425_p6)  ;;  %v796_v40 = vld [vmem:[%s2312_s7] sm:$0xff] (!%p425_p6)  ;;  %v797_v41 = vld [vmem:[%s2312_s7 + $0x8] sm:$0xff] (!%p425_p6)  ;;  %vm986_vm1 = vcmask (!%p425_p6), 130048  }
  0x12   : > { %s2327_s0 = sld [smem:[#allocation4_spill]] (!%p425_p6)  ;;  %s2328_s3 = sld [smem:[#allocation7_spill]] (!%p425_p6)  ;;  %v1678_v28 = vpack.c.bf16 (!%p425_p6), %v701_v27, %v700_v26  ;;  %v1682_v42 = vpack.c.bf16 (!%p425_p6), %v797_v41, %v796_v40  ;;  %v798_v43 = vld [vmem:[%s2312_s7 + $0x10] sm:$0xff] (!%p425_p6)  ;;  %v799_v44 = vld [vmem:[%s2312_s7 + $0x18] sm:$0xff] (!%p425_p6)  ;;  %v1506_v46 = vld [vmem:[%s2311_s6] ss:$0 sm:$0xff] (!%p425_p6) }
  0x13   : > { %s2329_s2 = sld [smem:[#allocation6_spill]] (!%p425_p6)  ;;  %s2330_s4 = sld [smem:[#allocation8_spill]] (!%p425_p6)  ;;  %v1686_v45 = vpack.c.bf16 (!%p425_p6), %v799_v44, %v798_v43  ;;  %v894_v57 = vld [vmem:[%s2314_s9] sm:$0xff] (!%p425_p6)  ;;  %v895_v58 = vld [vmem:[%s2314_s9 + $0x8] sm:$0xff] (!%p425_p6)  ;;  %v896_v63 = vld [vmem:[%s2314_s9 + $0x10] sm:$0xff] (!%p425_p6) }
  0x14   : > { %v1690_v59 = vpack.c.bf16 (!%p425_p6), %v895_v58, %v894_v57  ;;  %v989_v60 = vld [vmem:[%s2316_s11] sm:$0xff] (!%p425_p6)  ;;  %v990_v61 = vld [vmem:[%s2316_s11 + $0x8] sm:$0xff] (!%p425_p6) }
  0x15   : > { %v1698_v62 = vpack.c.bf16 (!%p425_p6), %v990_v61, %v989_v60 }
  0x16   : > { %v503_v0 = vld [vmem:[%s2326_s1] sm:$0xff] (!%p425_p6)  ;;  %v504_v1 = vld [vmem:[%s2326_s1 + $0x8] sm:$0xff] (!%p425_p6)  ;;  %v505_v2 = vld [vmem:[%s2326_s1 + $0x10] sm:$0xff] (!%p425_p6) }
  0x17   : > { %v1658_v3 = vpack.c.bf16 (!%p425_p6), %v504_v1, %v503_v0  ;;  %v506_v4 = vld [vmem:[%s2326_s1 + $0x18] sm:$0xff] (!%p425_p6)  ;;  %v991_v1 = vld [vmem:[%s2316_s11 + $0x10] sm:$0xff] (!%p425_p6) }
  0x18   : > { %v1662_v5 = vpack.c.bf16 %v506_v4, %v505_v2  ;;  %s483_s19 = scalar_select %p482_p7, %s2124_s28, 6  ;;  %v600_v8 = vld [vmem:[%s2328_s3] sm:$0xff]  ;;  %v601_v9 = vld [vmem:[%s2328_s3 + $0x8] sm:$0xff]  ;;  %v602_v11 = vld [vmem:[%s2328_s3 + $0x10] sm:$0xff] }
  0x19   : > { %1659 = vmatprep.subr.bf16.mxu0 %v1658_v3  ;;  %v1666_v10 = vpack.c.bf16 %v601_v9, %v600_v8  ;;  %v603_v12 = vld [vmem:[%s2328_s3 + $0x18] sm:$0xff]  ;;  %v1500_v14 = vld [vmem:[%s2329_s2] ss:$0 sm:$0xff]  ;;  %s1550_s26 = sshll.u32 (%p2110_p4), %s2098_s16, 4 }
  0x1a   : > { %1661 = vmatpush3.bf16.msra.mxu0 %v1658_v3  ;;  %s1499_s22 = sshll.u32 %s483_s19, 3  ;;  %v1670_v13 = vpack.c.bf16 %v603_v12, %v602_v11  ;;  %v1503_v29 = vld [vmem:[%s2330_s4] ss:$0 sm:$0xff]  ;;  %v897_v0 = vld [vmem:[%s2314_s9 + $0x18] sm:$0xff]  ;;  %s2240_s18 = scalar_lea.vmem (%p2110_p4), %s2318_s13, %s1550_s26  }
  0x1b   : > { %1663 = vmatprep.subr.bf16.mxu0 %v1662_v5  ;;  %s485_s25 = scalar_lea.vmem %s2327_s0, %s1499_s22  ;;  %1667 = vmatprep.subr.bf16.mxu1 %v1666_v10  ;;  %v1694_v2 = vpack.c.bf16 %v897_v0, %v896_v63  ;;  %v992_v3 = vld [vmem:[%s2316_s11 + $0x18] sm:$0xff]  ;;  %s468_s0 = sand.u32 1, %s1936_s29  }
  0x1c   : > { %v501_v6 = vld [vmem:[%s485_s25] sm:$0xff]  ;;  %v502_v7 = vld [vmem:[%s485_s25 + $0x8] sm:$0xff]  ;;  %1669 = vmatpush3.bf16.msra.mxu1 %v1666_v10  ;;  %v1702_v4 = vpack.c.bf16 %v992_v3, %v991_v1  ;;  %s1496_s15 = sshll.u32 %s468_s0, 4  ;;  %s1089_s25 = ssub.s32 (%p2110_p4), 7, %s2124_s28 }
  0x1d   : > { %1600 = vmatprep.mubr.msk.f32.mxu0 %vm514_vm0, %v501_v6  ;;  %1671 = vmatprep.subr.bf16.mxu1 %v1670_v13  ;;  %s2225_s24 = scalar_lea.vmem [#allocation2], %s1496_s15   ;;  %s2228_s29 = scalar_lea.vmem [#allocation3], %s1496_s15  }
  0x1e   : > { %1665 = vmatpush3.bf16.msra.mxu0 %v1662_v5  ;;  %v1509_v5 = vld [vmem:[%s2313_s8] ss:$0 sm:$0xff]  ;;  %p1090_p8 = scmp.lt.s32.totalorder (%p2110_p4), %s1089_s25, 2 }
  0x1f   : > { %1675 = vmatprep.subr.bf16.mxu0 %v1674_v25 }
  0x20   : > { %1673 = vmatpush3.bf16.msra.mxu1 %v1670_v13 }
  0x21   : > { %1601 = vmatmul.mubr.msk.f32.vlgmr.msra.gmra.mrb[0].mxu0 %vm514_vm0, %v502_v7  ;;  %1683 = vmatprep.subr.bf16.mxu1 %v1682_v42 }
  0x22   : > { %1677 = vmatpush3.bf16.msra.mxu0 %v1674_v25 }
  0x23   : > { %1679 = vmatprep.subr.bf16.mxu0 %v1678_v28 }
  0x26   : > { %1681 = vmatpush3.bf16.msra.mxu0 %v1678_v28 }
  0x27   : > { %1691 = vmatprep.subr.bf16.mxu0 %v1690_v59 }
  0xf4   : > { %v1602_v15 = vpop.f32.mrb[0].mxu0 }
  0xf5   : > { %v593_v16 = vadd.f32 %v1602_v15, %v1500_v14  ;;  %v587_v17 = vpop.f32.mrb[1].mxu0 }
  0xf6   : > { %v588_v18 = vadd.f32 %v1500_v14, %v587_v17  ;;  %v1515_v17 = vld [vmem:[%s2317_s12] ss:$0 sm:$0xff] }
  0xf7   : > { %v597_v19 = vmul.f32 0.2, %v593_v16 }
  0xf8   : > { %v596_v20 = vmul.f32 0.2, %v588_v18 }
  0xf9   : > { %v599_v22 = vmax.f32 %v593_v16, %v597_v19  ;;  %v1512_v16 = vld [vmem:[%s2315_s10] ss:$0 sm:$0xff] }
  0xfa   : > { %v598_v21 = vmax.f32 %v588_v18, %v596_v20 }
  0xfc   : > { %1611 = vmatprep.mubr.msk.f32.mxu1 %vm514_vm0, %v598_v21 }
  0xfd   : > { %1612 = vmatmul.mubr.msk.f32.vlgmr.msra.gmra.mrb[0].mxu1 %vm514_vm0, %v599_v22 }
  0xfe   : > { %1685 = vmatpush3.bf16.msra.mxu1 %v1682_v42 }
  0xff   : > { %1687 = vmatprep.subr.bf16.mxu1 %v1686_v45 }
 0x102   : > { %1689 = vmatpush3.bf16.msra.mxu1 %v1686_v45 }
 0x103   : > { %1699 = vmatprep.subr.bf16.mxu1 %v1698_v62 }
 0x1d0   : > { %v1613_v30 = vpop.f32.mrb[0].mxu1 }
 0x1d1   : > { %v689_v31 = vadd.f32 %v1613_v30, %v1503_v29  ;;  %v683_v32 = vpop.f32.mrb[1].mxu1 }
 0x1d2   : > { %v684_v33 = vadd.f32 %v1503_v29, %v683_v32 }
 0x1d3   : > { %v693_v34 = vmul.f32 0.2, %v689_v31 }
 0x1d4   : > { %v692_v35 = vmul.f32 0.2, %v684_v33 }
 0x1d5   : > { %v695_v36 = vmax.f32 %v689_v31, %v693_v34 }
 0x1d6   : > { %v694_v37 = vmax.f32 %v684_v33, %v692_v35 }
 0x1d7   : > { %v697_v39 = vadd.f32 %v695_v36, %v599_v22 }
 0x1d8   : > { %v696_v38 = vadd.f32 %v694_v37, %v598_v21 }
 0x1da   : > { %1622 = vmatprep.mubr.msk.f32.mxu0 %vm514_vm0, %v696_v38 }
 0x1db   : > { %1623 = vmatmul.mubr.msk.f32.vlgmr.msra.gmra.mrb[2].mxu0 %vm514_vm0, %v697_v39 }
 0x1dc   : > { %1693 = vmatpush3.bf16.msra.mxu0 %v1690_v59 }
 0x1dd   : > { %1695 = vmatprep.subr.bf16.mxu0 %v1694_v2 }
 0x1e0   : > { %1697 = vmatpush3.bf16.msra.mxu0 %v1694_v2 }
 0x2ae   : > { %v1624_v47 = vpop.f32.mrb[2].mxu0 }
 0x2af   : > { %v787_v48 = vadd.f32 %v1624_v47, %v1506_v46  ;;  %v781_v49 = vpop.f32.mrb[3].mxu0 }
 0x2b0   : > { %v782_v50 = vadd.f32 %v1506_v46, %v781_v49 }
 0x2b1   : > { %v791_v51 = vmul.f32 0.2, %v787_v48 }
 0x2b2   : > { %v790_v52 = vmul.f32 0.2, %v782_v50 }
 0x2b3   : > { %v793_v53 = vmax.f32 %v787_v48, %v791_v51 }
 0x2b4   : > { %v792_v54 = vmax.f32 %v782_v50, %v790_v52 }
 0x2b5   : > { %v795_v56 = vadd.f32 %v793_v53, %v697_v39 }
 0x2b6   : > { %v794_v55 = vadd.f32 %v792_v54, %v696_v38 }
 0x2b8   : > { %1633 = vmatprep.mubr.msk.f32.mxu1 %vm514_vm0, %v794_v55 }
 0x2b9   : > { %1634 = vmatmul.mubr.msk.f32.vlgmr.msra.gmra.mrb[2].mxu1 %vm514_vm0, %v795_v56 }
 0x2ba   : > { %1701 = vmatpush3.bf16.msra.mxu1 %v1698_v62 }
 0x2bb   : > { %1703 = vmatprep.subr.bf16.mxu1 %v1702_v4 }
 0x2be   : > { %1705 = vmatpush3.bf16.msra.mxu1 %v1702_v4 }
 0x38c   : > { %v1635_v6 = vpop.f32.mrb[2].mxu1 }
 0x38d   : > { %v885_v7 = vadd.f32 %v1635_v6, %v1509_v5  ;;  %v879_v8 = vpop.f32.mrb[3].mxu1 }
 0x38e   : > { %v880_v9 = vadd.f32 %v1509_v5, %v879_v8 }
 0x38f   : > { %v889_v10 = vmul.f32 0.2, %v885_v7 }
 0x390   : > { %v888_v11 = vmul.f32 0.2, %v880_v9 }
 0x391   : > { %v891_v12 = vmax.f32 %v885_v7, %v889_v10 }
 0x392   : > { %v890_v13 = vmax.f32 %v880_v9, %v888_v11 }
 0x393   : > { %v893_v15 = vadd.f32 %v891_v12, %v795_v56 }
 0x394   : > { %v892_v14 = vadd.f32 %v890_v13, %v794_v55 }
 0x396   : > { %1644 = vmatprep.mubr.msk.f32.mxu0 %vm514_vm0, %v892_v14  ;;  %1655 = vmatprep.mubr.msk.f32.mxu1 %vm514_vm0, %v892_v14 }
 0x397   : > { %1645 = vmatmul.mubr.msk.f32.vlgmr.msra.gmra.mrb[4].mxu0 %vm514_vm0, %v893_v15  ;;  %1656 = vmatmul.mubr.msk.f32.vlgmr.msra.gmra.mrb[4].mxu1 %vm514_vm0, %v893_v15 }
 0x468   : > { %1087 = sbr.rel (!%p2110_p4) target bundleno = 1184 (0x4a0), region = 76 }
 0x46a   : > { %v1646_v18 = vpop.f32.mrb[4].mxu0  ;;  %v1657_v19 = vpop.f32.mrb[4].mxu1 }
 0x46b   : > { %v983_v20 = vadd.f32 %v1646_v18, %v1512_v16  ;;  %v1072_v21 = vadd.f32 %v1657_v19, %v1515_v17  ;;  %v977_v22 = vpop.f32.mrb[5].mxu0  ;;  %v1066_v23 = vpop.f32.mrb[5].mxu1 }
 0x46c   : > { %v978_v24 = vadd.f32 %v1512_v16, %v977_v22  ;;  %v1067_v25 = vadd.f32 %v1515_v17, %v1066_v23 }
 0x46d   : > { %988 = vst.msk [vmem:[%s2225_s24 + $0x8] sm:$0xff] %vm986_vm1, %v983_v20  ;;  %1076 = vst.msk [vmem:[%s2228_s29 + $0x8] sm:$0xff] %vm986_vm1, %v1072_v21 }
 0x46e   : > { %987 = vst.msk [vmem:[%s2225_s24] sm:$0xff] %vm986_vm1, %v978_v24  ;;  %1075 = vst.msk [vmem:[%s2228_s29] sm:$0xff] %vm986_vm1, %v1067_v25 }
 0x46f   : > { %s2335_s25 = smov (!%p1090_p8, %s1089_s25), 2 }
 0x470   : > { %s1521_s15 = sshll.u32 %s2335_s25, 7 }
 0x471   : > { %p1524_p9 = scmp.eq.s32.totalorder %s1521_s15, 0 }
 0x472   : > { %s2246_s19 = sshrl.u32 (!%p1524_p9), %s2335_s25, 1 }
 0x473   : > { %1098 = sbr.rel (%p1524_p9) target bundleno = 1184 (0x4a0), region = 80  ;;  %p1525_p10 = scmp.le.s32.totalorder (!%p1524_p9), %s2246_s19, 0 }
 0x47a   : > { %1411 = sbr.rel (%p1525_p10) target bundleno = 1163 (0x48b), region = 228  ;;  %s1946_s22 = smov (!%p1525_p10), %s2240_s18  }
 0x47b   : > { %s1950_s23 = smov (!%p1525_p10), %s2225_s24   ;;  %s1954_s1 = smov (!%p1525_p10), 0  }
 0x47c   : > { %s1958_s27 = smov (!%p1525_p10), 0  }
 0x481 LB: >> { %v1162_v26 = vld [vmem:[%s1952_s23] sm:$0xff]  ;;  %v1164_v27 = vld [vmem:[%s1952_s23 + $0x8] sm:$0xff]  ;;  %s1166_s26 = sadd.s32 1, %s1956_s1  ;;  %s1156_s27 = sadd.s32 1, %s1960_s27   ;;  %s1960_s27 = sphi %s1958_s27, %s1156_s27   ;;  %s1956_s1 = sphi %s1954_s1, %s1955_s1   ;;  %s1952_s23 = sphi %s1950_s23, %s1171_s23   ;;  %s1948_s22 = sphi %s1946_s22, %s1172_s22  }
 0x482   : >> { %1163 = vst [vmem:[%s1948_s22] sm:$0xff] %v1162_v26  ;;  %1165 = vst [vmem:[%s1948_s22 + $0x8] sm:$0xff] %v1164_v27  ;;  %p1167_p11 = scmp.ge.s32.totalorder %s1166_s26, %s2246_s19  ;;  %p1155_p12 = scmp.ge.s32.totalorder %s1156_s27, %s2246_s19 }
 0x484   : >> { %s2337_s26 = smov (%p1167_p11, %s1166_s26), 0  ;;  %1158 = sbr.rel (!%p1155_p12) target bundleno = 1153 (0x481), region = 234 }
 0x485   : >> { %s1526_s0 = sshll.u32 %s2337_s26, 4  ;;  %s1955_s1 = smov %s2337_s26  }
 0x486   : >> { %s1171_s23 = scalar_lea.vmem %s2225_s24, %s1526_s0 [#allocation2]   ;;  %s1172_s22 = scalar_lea.vmem %s2240_s18, %s1526_s0  }
 0x48b PF: > { %s2256_s1 = sand.u32 1, %s2335_s25   ;;  %s1551_s15 = sshll.u32 %s2246_s19, 4 }
 0x48c   : > { %s1177_s2 = scalar_lea.vmem %s2225_s24, %s1551_s15 [#allocation2]   ;;  %s1179_s3 = scalar_lea.vmem %s2240_s18, %s1551_s15  }
 0x48d   : > { %p1531_p13 = scmp.le.s32.totalorder %s2256_s1, 0 }
 0x48e   : > { %s1962_s0 = smov (!%p1531_p13), %s1179_s3   ;;  %s1966_s4 = smov (!%p1531_p13), %s1177_s2  }
 0x48f   : > { %1425 = sbr.rel (%p1531_p13) target bundleno = 1184 (0x4a0), region = 239  ;;  %s1970_s22 = smov (!%p1531_p13), 0  }
 0x490   : > { %s1974_s23 = smov (!%p1531_p13), 0  }
 0x496 LB: >> { %v1189_v28 = vld [vmem:[%s1968_s4] sm:$0xff]  ;;  %s1191_s25 = sadd.s32 1, %s1972_s22  ;;  %s1183_s23 = sadd.s32 1, %s1976_s23   ;;  %s1976_s23 = sphi %s1974_s23, %s1183_s23   ;;  %s1972_s22 = sphi %s1970_s22, %s1971_s22   ;;  %s1968_s4 = sphi %s1966_s4, %s1196_s4   ;;  %s1964_s0 = sphi %s1962_s0, %s1197_s0  }
 0x497   : >> { %1190 = vst [vmem:[%s1964_s0] sm:$0xff] %v1189_v28  ;;  %p1192_p0 = scmp.ge.s32.totalorder %s1191_s25, %s2256_s1  ;;  %p1182_p1 = scmp.ge.s32.totalorder %s1183_s23, %s2256_s1 }
 0x499   : >> { %s2339_s25 = smov (%p1192_p0, %s1191_s25), 0  ;;  %1185 = sbr.rel (!%p1182_p1) target bundleno = 1174 (0x496), region = 245 }
 0x49a   : >> { %s1532_s24 = sshll.u32 %s2339_s25, 3  ;;  %s1971_s22 = smov %s2339_s25  }
 0x49b   : >> { %s1196_s4 = scalar_lea.vmem %s1177_s2, %s1532_s24 [#allocation2]   ;;  %s1197_s0 = scalar_lea.vmem %s1179_s3, %s1532_s24  }
 0x4a0 PF: > { %1203 = sbr.rel (!%p2110_p4) target bundleno = 1240 (0x4d8), region = 128  ;;  %s1205_s18 = ssub.s32 (%p2110_p4), 7, %s2124_s28 }
 0x4a1   : > { %s1553_s19 = sshll.u32 (%p2110_p4), %s2098_s16, 4  ;;  %p1206_p2 = scmp.lt.s32.totalorder (%p2110_p4), %s1205_s18, 2 }
 0x4a2   : > { %s2271_s15 = scalar_lea.vmem (%p2110_p4), %s2319_s14, %s1553_s19  }
 0x4a7   : > { %s2341_s18 = smov (!%p1206_p2, %s1205_s18), 2 }
 0x4a8   : > { %s1535_s4 = sshll.u32 %s2341_s18, 7 }
 0x4a9   : > { %p1538_p3 = scmp.eq.s32.totalorder %s1535_s4, 0 }
 0x4aa   : > { %s2277_s2 = sshrl.u32 (!%p1538_p3), %s2341_s18, 1 }
 0x4ab   : > { %1214 = sbr.rel (%p1538_p3) target bundleno = 1240 (0x4d8), region = 132  ;;  %p1539_p4 = scmp.le.s32.totalorder (!%p1538_p3), %s2277_s2, 0 }
 0x4b2   : > { %1439 = sbr.rel (%p1539_p4) target bundleno = 1219 (0x4c3), region = 250  ;;  %s1978_s3 = smov (!%p1539_p4), %s2271_s15  }
 0x4b3   : > { %s1982_s16 = smov (!%p1539_p4), %s2228_s29   ;;  %s1986_s21 = smov (!%p1539_p4), 0  }
 0x4b4   : > { %s1990_s28 = smov (!%p1539_p4), 0  }
 0x4b9 LB: >> { %v1278_v29 = vld [vmem:[%s1984_s16] sm:$0xff]  ;;  %v1280_v30 = vld [vmem:[%s1984_s16 + $0x8] sm:$0xff]  ;;  %s1282_s1 = sadd.s32 1, %s1988_s21  ;;  %s1272_s28 = sadd.s32 1, %s1992_s28   ;;  %s1992_s28 = sphi %s1990_s28, %s1272_s28   ;;  %s1988_s21 = sphi %s1986_s21, %s1987_s21   ;;  %s1984_s16 = sphi %s1982_s16, %s1287_s16   ;;  %s1980_s3 = sphi %s1978_s3, %s1288_s3  }
 0x4ba   : >> { %1279 = vst [vmem:[%s1980_s3] sm:$0xff] %v1278_v29  ;;  %1281 = vst [vmem:[%s1980_s3 + $0x8] sm:$0xff] %v1280_v30  ;;  %p1283_p5 = scmp.ge.s32.totalorder %s1282_s1, %s2277_s2  ;;  %p1271_p6 = scmp.ge.s32.totalorder %s1272_s28, %s2277_s2 }
 0x4bc   : >> { %s2343_s1 = smov (%p1283_p5, %s1282_s1), 0  ;;  %1274 = sbr.rel (!%p1271_p6) target bundleno = 1209 (0x4b9), region = 256 }
 0x4bd   : >> { %s1540_s0 = sshll.u32 %s2343_s1, 4  ;;  %s1987_s21 = smov %s2343_s1  }
 0x4be   : >> { %s1287_s16 = scalar_lea.vmem %s2228_s29, %s1540_s0 [#allocation3]   ;;  %s1288_s3 = scalar_lea.vmem %s2271_s15, %s1540_s0  }
 0x4c3 PF: > { %s2287_s22 = sand.u32 1, %s2341_s18   ;;  %s1554_s23 = sshll.u32 %s2277_s2, 4 }
 0x4c4   : > { %s1293_s25 = scalar_lea.vmem %s2228_s29, %s1554_s23 [#allocation3]   ;;  %s1295_s24 = scalar_lea.vmem %s2271_s15, %s1554_s23  }
 0x4c5   : > { %p1545_p7 = scmp.le.s32.totalorder %s2287_s22, 0 }
 0x4c6   : > { %s1994_s19 = smov (!%p1545_p7), %s1295_s24   ;;  %s1998_s27 = smov (!%p1545_p7), %s1293_s25  }
 0x4c7   : > { %1453 = sbr.rel (%p1545_p7) target bundleno = 1240 (0x4d8), region = 261  ;;  %s2002_s26 = smov (!%p1545_p7), 0  }
 0x4c8   : > { %s2006_s4 = smov (!%p1545_p7), 0  }
 0x4ce LB: >> { %v1305_v31 = vld [vmem:[%s2000_s27] sm:$0xff]  ;;  %s1307_s18 = sadd.s32 1, %s2004_s26  ;;  %s1299_s4 = sadd.s32 1, %s2008_s4   ;;  %s2008_s4 = sphi %s2006_s4, %s1299_s4   ;;  %s2004_s26 = sphi %s2002_s26, %s2003_s26   ;;  %s2000_s27 = sphi %s1998_s27, %s1312_s27   ;;  %s1996_s19 = sphi %s1994_s19, %s1313_s19  }
 0x4cf   : >> { %1306 = vst [vmem:[%s1996_s19] sm:$0xff] %v1305_v31  ;;  %p1308_p8 = scmp.ge.s32.totalorder %s1307_s18, %s2287_s22  ;;  %p1298_p9 = scmp.ge.s32.totalorder %s1299_s4, %s2287_s22 }
 0x4d1   : >> { %s2345_s18 = smov (%p1308_p8, %s1307_s18), 0  ;;  %1301 = sbr.rel (!%p1298_p9) target bundleno = 1230 (0x4ce), region = 267 }
 0x4d2   : >> { %s1546_s29 = sshll.u32 %s2345_s18, 3  ;;  %s2003_s26 = smov %s2345_s18  }
 0x4d3   : >> { %s1312_s27 = scalar_lea.vmem %s1293_s25, %s1546_s29 [#allocation3]   ;;  %s1313_s19 = scalar_lea.vmem %s1295_s24, %s1546_s29  }
 0x4d8 PF: > { %p22_p10 = scmp.ge.s32.totalorder %s2100_s17, 6   ;;  %s2331_s29 = smov %s1940_s30 }
 0x4d9   : > { %s2332_s30 = smov %s2108_s20  ;;  %s2333_s15 = smov %s2100_s17 }
 0x4da   :  { %24 = sbr.rel (!%p22_p10) target bundleno = 8 (0x8), region = 278 }

</bundles_post_ra>
